<compile_context>
chip_gen: v5e
topology: v5e:2x2
jax: 0.10.0
libtpu: 0.0.40
codegen_flags: <defaults>
</compile_context>

<pallas_src>
import functools

import jax
import jax.numpy as jnp
from jax.experimental import pallas as pl
from jax.experimental.pallas import tpu as pltpu


def _mean_kernel_single(n_ref, x_ref, o_ref):
    """Whole node axis in one block: no scratch, no predication."""
    inv_n = 1.0 / n_ref[0].astype(jnp.float32)
    o_ref[...] = (
        jnp.sum(x_ref[...].astype(jnp.float32), axis=1) * inv_n
    ).astype(o_ref.dtype)


def _mean_kernel_multi(n_ref, x_ref, o_ref, acc_ref, *, tn, mask_tail):
    """Tiled reduction over N (grid axis 2, 'arbitrary'), f32 scratch accumulator."""
    k = pl.program_id(2)

    @pl.when(k == 0)
    def _():
        acc_ref[...] = jnp.zeros_like(acc_ref)

    x = x_ref[...].astype(jnp.float32)
    if mask_tail:
        # Pallas does NOT zero-fill out-of-bounds tail blocks along N -> mask them.
        node_idx = k * tn + jax.lax.broadcasted_iota(jnp.int32, x.shape, 1)
        x = jnp.where(node_idx < n_ref[0], x, 0.0)
    acc_ref[...] += jnp.sum(x, axis=1)

    @pl.when(k == pl.num_programs(2) - 1)
    def _():
        inv_n = 1.0 / n_ref[0].astype(jnp.float32)
        o_ref[...] = (acc_ref[...] * inv_n).astype(o_ref.dtype)


def mean_readout(x, node_axis=1, *, block_bytes=4 << 20):
    """Pallas implementation of MeanReadout.forward(x, node_axis=1).

    x: (B, N, F) float array -> (B, F) mean over axis 1.
    """
    assert x.ndim == 3 and node_axis == 1, "kernel handles (B, N, F) with node_axis=1"
    B, N, F = x.shape
    itemsize = jnp.dtype(x.dtype).itemsize

    # Batch (sublane) tile: 8 rows, or the full B when B < 8 (full-dim blocks allowed).
    bb = 8 if B >= 8 else B

    # Feature tile: prefer the full F (contiguous HBM runs, no F grid axis).
    # Only split F when even an (bb, 8, F) slab would blow the VMEM budget.
    if bb * 8 * F * itemsize <= block_bytes:
        tf = F
    else:
        tf = max(128, (block_bytes // (bb * 8 * itemsize)) // 128 * 128)

    b_tiles = pl.cdiv(B, bb)
    f_tiles = pl.cdiv(F, tf)

    # v7x megacore: make sure the parallel (B, F) grid has >= 2 blocks so both
    # TensorCores stream HBM.  Only split F when it stays a 128-multiple.
    if b_tiles * f_tiles < 2 and tf == F and F >= 256 and F % 256 == 0:
        tf = F // 2
        f_tiles = 2

    # Node tile: biggest 8-multiple keeping the input block within the budget,
    # or the full N when it already fits (single reduction step).
    max_tn = max(8, (block_bytes // (bb * tf * itemsize)) // 8 * 8)
    tn = N if N <= max_tn else max_tn
    n_tiles = pl.cdiv(N, tn)

    # True node count as an SMEM scalar (scalar prefetch): used for the tail
    # mask and the 1/N scale -- no Python-float baked into the kernel.
    n_arr = jnp.array([N], dtype=jnp.int32)

    if n_tiles == 1:
        out = pl.pallas_call(
            _mean_kernel_single,
            out_shape=jax.ShapeDtypeStruct((B, F), x.dtype),
            grid_spec=pltpu.PrefetchScalarGridSpec(
                num_scalar_prefetch=1,
                grid=(b_tiles, f_tiles),
                in_specs=[pl.BlockSpec((bb, tn, tf), lambda b, f, n_s: (b, 0, f))],
                out_specs=pl.BlockSpec((bb, tf), lambda b, f, n_s: (b, f)),
            ),
            compiler_params=pltpu.CompilerParams(
                dimension_semantics=("parallel", "parallel"),
            ),
        )(n_arr, x)
    else:
        kernel = functools.partial(
            _mean_kernel_multi, tn=tn, mask_tail=(N % tn != 0)
        )
        out = pl.pallas_call(
            kernel,
            out_shape=jax.ShapeDtypeStruct((B, F), x.dtype),
            grid_spec=pltpu.PrefetchScalarGridSpec(
                num_scalar_prefetch=1,
                grid=(b_tiles, f_tiles, n_tiles),
                in_specs=[pl.BlockSpec((bb, tn, tf), lambda b, f, k, n_s: (b, k, f))],
                out_specs=pl.BlockSpec((bb, tf), lambda b, f, k, n_s: (b, f)),
                scratch_shapes=[pltpu.VMEM((bb, tf), jnp.float32)],
            ),
            compiler_params=pltpu.CompilerParams(
                dimension_semantics=("parallel", "parallel", "arbitrary"),
            ),
        )(n_arr, x)

    return out


if __name__ == "__main__":
    # MeanReadout has no parameters, so nothing to initialize.
    key = jax.random.PRNGKey(0)
    B, N, F = 2, 8, 32  # batch, nodes, hidden features
    x = jax.random.normal(key, (B, N, F), dtype=jnp.float32)

    out = mean_readout(x)
    out = jax.block_until_ready(out)

    ref = jnp.mean(x, axis=1)
    assert out.shape == (B, F)
    assert jnp.allclose(out, ref, atol=1e-6, rtol=1e-6)

    # Exercise the multi-step (tiled-N, masked-tail) path as well.
    B2, N2, F2 = 3, 4100, 384  # N2 forced past max_tn, not a multiple of the tile
    x2 = jax.random.normal(jax.random.PRNGKey(1), (B2, N2, F2), dtype=jnp.float32)
    out2 = jax.block_until_ready(mean_readout(x2, block_bytes=1 << 20))
    ref2 = jnp.mean(x2, axis=1)
    assert jnp.allclose(out2, ref2, atol=1e-5, rtol=1e-5)

    print("KERNEL_OK")
</pallas_src>

<mosaic_0001>
module attributes {stable_mosaic.version = 11 : i64} {
  func.func @_mean_kernel_single(%arg0: i32, %arg1: i32, %arg2: memref<1xi32, #tpu.memory_space<smem>>, %arg3: memref<2x8x32xf32, #tpu.memory_space<vmem>>, %arg4: memref<2x32xf32, #tpu.memory_space<vmem>>) attributes {dimension_semantics = [#tpu.dimension_semantics<parallel>, #tpu.dimension_semantics<parallel>], iteration_bounds = array<i64: 1, 1>, scalar_prefetch = 1 : i64, scratch_operands = 0 : i64, tpu.core_type = #tpu.core_type<tc>, window_params = [{transform_indices = @transform_0, window_bounds = array<i64: 2, 8, 32>}, {transform_indices = @transform_1, window_bounds = array<i64: 2, 32>}]} {
    %c0 = arith.constant 0 : index
    %0 = memref.load %arg2[%c0] : memref<1xi32, #tpu.memory_space<smem>>
    %1 = arith.sitofp %0 : i32 to f32
    %cst = arith.constant 1.000000e+00 : f32
    %2 = arith.divf %cst, %1 : f32
    %c0_0 = arith.constant 0 : index
    %c0_1 = arith.constant 0 : index
    %c0_2 = arith.constant 0 : index
    %3 = vector.load %arg3[%c0_0, %c0_1, %c0_2] : memref<2x8x32xf32, #tpu.memory_space<vmem>>, vector<2x8x32xf32>
    %cst_3 = arith.constant dense<0.000000e+00> : vector<2x32xf32>
    %4 = vector.multi_reduction <add>, %3, %cst_3 [1] : vector<2x8x32xf32> to vector<2x32xf32>
    %5 = vector.broadcast %2 : f32 to vector<2x32xf32>
    %6 = arith.mulf %4, %5 : vector<2x32xf32>
    %c0_4 = arith.constant 0 : index
    %c0_5 = arith.constant 0 : index
    %7 = vector.load %arg4[%c0_4, %c0_5] : memref<2x32xf32, #tpu.memory_space<vmem>>, vector<2x32xf32>
    tpu.vector_store %arg4[%c0_4, %c0_5], %6 {strides = array<i32>} : memref<2x32xf32, #tpu.memory_space<vmem>>, vector<2x32xf32>,
    return
  }
  func.func @transform_0(%arg0: i32, %arg1: i32, %arg2: memref<1xi32, #tpu.memory_space<smem>>) -> (i32, i32, i32) {
    %c0_i32 = arith.constant 0 : i32
    %c0_i32_0 = arith.constant 0 : i32
    return %arg0, %c0_i32, %arg1 : i32, i32, i32
  }
  func.func @transform_1(%arg0: i32, %arg1: i32, %arg2: memref<1xi32, #tpu.memory_space<smem>>) -> (i32, i32) {
    %c0_i32 = arith.constant 0 : i32
    return %arg0, %arg1 : i32, i32
  }
}

</mosaic_0001>

<bundles_post_ra>
// kernel: tpu_custom_call.1
= control target key start
LH: loop header
LB: loop body
LE: loop exit
PB: predicated region body
PF: predicated region fallthrough
CT: control target
= control target key end

     0   :  { %8 = vsyncpa [#allocation5], 0  ;;  %s177_s0 = inlined_call_operand.<no memory space> [shape: s32[1], index: 0, kind: input, shape index: {}]   ;;  %s178_s1 = inlined_call_operand.hbm [shape: f32[2,8,32], index: 1, kind: input, shape index: {}]   ;;  %s179_s2 = inlined_call_operand.hbm [shape: f32[2,32], index: 2, kind: output, shape index: {}]  }
   0x1   :  { %9 = vsyncpa [#allocation6], 0  ;;  %s14_s11 = sshll.u32 %s178_s1, 4  ;;  %s149_s12 = smov [#allocation4]   ;;  %s15_s11 = int_to_ptr.hbm [resolvable:$true] %s14_s11 }
   0x2   :  { %s16_s13 = sshll.u32 %s149_s12, 4  ;;  %s150_s14 = smov 128   ;;  %s17_s13 = int_to_ptr.vmem [resolvable:$true] %s16_s13 }
   0x3   :  { %s151_s15 = smov 8   ;;  %s28_s18 = scvt.s32.f32 %s177_s0 }
   0x4   :  { %22 = dma.hbm_to_vmem [thread:$0]  %s15_s11, 256, %s17_s13, [#allocation5], %s150_s14, %s150_s14, %s151_s15  }
   0x5   :  { %145 = dma.done.wait [#allocation5], 256  }
   0x6   :  { %146 = vsyncadd [#allocation5], 4294967040  ;;  %v29_v0 = vstv %s28_s18  ;;  %v45_v11 = vld [vmem:[#allocation4] sm:$0xff]  ;;  %v46_v12 = vld [vmem:[#allocation4 + $0x8] sm:$0xff]  ;;  %vm47_vm4 = vcmask 261120   ;;  %s152_s0 = smov [#allocation7]  }
   0x7   :  { %95 = vrcp.f32 %v29_v0  ;;  %v41_v3 = vand.u32 2147483648, %v29_v0  ;;  %vm35_vm0 = vweird.f32 %v29_v0  ;;  %v39_v5 = vand.u32 2147483647, %v29_v0  ;;  %s77_s1 = sshll.u32 %s152_s0, 4  ;;  %s79_s22 = sshll.u32 %s179_s2, 4  ;;  %s78_s1 = int_to_ptr.vmem [resolvable:$true] %s77_s1  ;;  %s80_s22 = int_to_ptr.hbm [resolvable:$true] %s79_s22 }
   0x8   :  { %v48_v13 = vsel %vm47_vm4, %v45_v11, 0.0  ;;  %v55_v14 = vsel %vm47_vm4, %v46_v12, 0.0  ;;  %vm67_vm5 = vcmask 1041409   ;;  %vm70_vm6 = vcmask 254976  }
   0x9   :  { %v42_v7 = vor.u32 1.1754944e-38, %v41_v3  ;;  %vm40_vm3 = vcmp.eq.f32.partialorder %v39_v5, 8.507059e+37  ;;  %v49_v15 = vrot.slane %v48_v13, 4  ;;  %v56_v16 = vrot.slane %v55_v14, 4 }
   0xb   :  { %v50_v17 = vadd.f32 %v49_v15, %v48_v13  ;;  %v57_v18 = vadd.f32 %v56_v16, %v55_v14 }
   0xd   :  { %v96_v1 = vpop.eup %95  ;;  %v51_v19 = vrot.slane %v50_v17, 2  ;;  %v58_v20 = vrot.slane %v57_v18, 2 }
   0xe   :  { %v31_v2 = vmul.f32 %v96_v1, %v29_v0  ;;  %vm36_vm1 = vweird.f32 %v96_v1 }
   0xf   :  { %vm37_vm2 = vmor %vm35_vm0, %vm36_vm1  ;;  %v52_v21 = vadd.f32 %v51_v19, %v50_v17  ;;  %v59_v22 = vadd.f32 %v58_v20, %v57_v18 }
  0x10   :  { %v32_v4 = vsub.f32 1.0, %v31_v2 }
  0x11   :  { %v53_v23 = vrot.slane %v52_v21, 1  ;;  %v60_v24 = vrot.slane %v59_v22, 1 }
  0x12   :  { %v33_v6 = vmul.f32 %v96_v1, %v32_v4 }
  0x13   :  { %v54_v25 = vadd.f32 %v53_v23, %v52_v21  ;;  %v61_v26 = vadd.f32 %v60_v24, %v59_v22 }
  0x14   :  { %v34_v8 = vadd.f32 %v96_v1, %v33_v6 }
  0x16   :  { %v38_v9 = vsel %vm37_vm2, %v96_v1, %v34_v8 }
  0x17   :  { %v43_v10 = vsel %vm40_vm3, %v42_v7, %v38_v9 }
  0x18   :  { %89 = vpush %v43_v10 }
  0x49   :  { %s90_s19 = spop %89 }
  0x4a   :  { %v62_v27 = vstv %s90_s19 }
  0x4b   :  { %v63_v28 = vmul.f32 %v62_v27, %v54_v25  ;;  %v64_v29 = vmul.f32 %v62_v27, %v61_v26 }
  0x4d   :  { %v68_v30 = vsel %vm67_vm5, %v64_v29, %v63_v28 }
  0x4e   :  { %71 = vst.msk [vmem:[#allocation7] sm:$0x3] %vm70_vm6, %v68_v30 }
  0x4f   :  { %82 = dma.vmem_to_hbm [thread:$0]  %s78_s1, 32, %s80_s22, [#allocation6]  }
  0x50   :  { %147 = dma.done.wait [#allocation6], 32  }
  0x51   :  { %148 = vsyncadd [#allocation6], 4294967264 }
  0x52   :  { %87 = vsyncpa [#allocation5], 1 }
  0x53   :  { %88 = vsyncpa [#allocation6], 1 }

</bundles_post_ra>
